<compile_context>
chip_gen: v7x
topology: tpu7x:2x2x1
jax: 0.10.0
libtpu: 0.0.40
codegen_flags: <defaults>
</compile_context>

<pallas_src>
import jax
import jax.numpy as jnp
from jax.experimental import pallas as pl
from jax.experimental.pallas import tpu as pltpu

DEFAULT_TOK_BLOCK = 512  # tokens gathered per grid step (lane-dense slab)


def embedding_gather_kernel(ids_ref, table_ref, out_ref, sem):
    # ids_ref:   SMEM [n_pad] int32    (scalar-prefetched token ids)
    # table_ref: HBM  [V, D]           (memory_space=pl.ANY, never copied whole)
    # out_ref:   VMEM [tok_block, D]   (this tile's lane-dense output slab)
    # sem:       DMA semaphore (shared; every row copy has identical size)
    tok_block = out_ref.shape[0]
    base = pl.program_id(0) * tok_block

    # Issue all row DMAs for this tile: HBM table row -> output slab row.
    @pl.loop(0, tok_block)
    def _(t):
        row = ids_ref[base + t]
        pltpu.make_async_copy(
            table_ref.at[pl.ds(row, 1)],   # [1, D] HBM source row
            out_ref.at[pl.ds(t, 1)],       # [1, D] VMEM destination row
            sem,
        ).start()

    # Drain: all copies are [1, D]; waiting with a same-sized descriptor
    # retires one completed row copy per wait.
    @pl.loop(0, tok_block)
    def _(t):
        pltpu.make_async_copy(
            table_ref.at[pl.ds(0, 1)],
            out_ref.at[pl.ds(0, 1)],
            sem,
        ).wait()


def _round_up(x, m):
    return ((x + m - 1) // m) * m


def initial_layer_forward(tokens, emb_table, *, tok_block=DEFAULT_TOK_BLOCK):
    """tokens: [B, S] int, emb_table: [V, D] -> [B, S, D]."""
    B, S = tokens.shape
    V, D = emb_table.shape
    N = B * S
    itemsize = jnp.dtype(emb_table.dtype).itemsize

    # Per-generation VMEM budget (v7x: 64 MiB/TC, v5e/v6e: 128 MiB).
    try:
        info = pltpu.get_tpu_info()
        vmem_capacity = int(getattr(info, "vmem_capacity_bytes",
                                    64 * 1024 * 1024))
    except Exception:
        vmem_capacity = 64 * 1024 * 1024
    budget = (vmem_capacity * 3) // 4  # leave headroom for compiler scratch

    # Tile of tokens per grid step.  Only the double-buffered [tok_block, D]
    # output slab lives in VMEM; shrink the tile (never clamp the limit below
    # the footprint) until it fits the per-generation budget.
    tok_block = min(tok_block, _round_up(N, 8))
    tok_block = max(8, _round_up(tok_block, 8))
    while tok_block > 8 and 2 * tok_block * D * itemsize > budget:
        tok_block //= 2

    num_tiles = pl.cdiv(N, tok_block)
    n_pad = num_tiles * tok_block

    # Flatten + clip ids: guards the padded tail and out-of-range ids against
    # OOB HBM DMA (torch would raise on out-of-range — documented divergence).
    ids = jnp.clip(tokens.reshape(N).astype(jnp.int32), 0, V - 1)
    if n_pad != N:
        ids = jnp.pad(ids, (0, n_pad - N))

    out_block_bytes = tok_block * D * itemsize
    vmem_limit = int(min(budget, max(32 * 1024 * 1024, 4 * out_block_bytes)))

    out = pl.pallas_call(
        embedding_gather_kernel,
        out_shape=jax.ShapeDtypeStruct((n_pad, D), emb_table.dtype),
        grid_spec=pltpu.PrefetchScalarGridSpec(
            num_scalar_prefetch=1,                         # ids -> SMEM
            grid=(num_tiles,),
            in_specs=[pl.BlockSpec(memory_space=pl.ANY)],  # table stays in HBM
            out_specs=pl.BlockSpec((tok_block, D), lambda i, ids: (i, 0)),
            scratch_shapes=[pltpu.SemaphoreType.DMA(())],
        ),
        compiler_params=pltpu.CompilerParams(
            dimension_semantics=("parallel",),  # independent output tiles
            vmem_limit_bytes=vmem_limit,
        ),
    )(ids, emb_table)

    if n_pad != N:
        out = out[:N]
    return out.reshape(B, S, D)


if __name__ == "__main__":
    # ModelArgs-equivalent small config
    vocab_size, dim = 64, 128
    B, S = 2, 8

    key = jax.random.PRNGKey(0)
    k_emb, k_tok = jax.random.split(key)

    # deterministic parameter init (nn.Embedding weight: [vocab_size, dim])
    emb_table = jax.random.normal(k_emb, (vocab_size, dim), dtype=jnp.float32)
    tokens = jax.random.randint(k_tok, (B, S), 0, vocab_size, dtype=jnp.int32)

    out = jax.block_until_ready(initial_layer_forward(tokens, emb_table))
    ref = emb_table[tokens]
    assert out.shape == (B, S, dim)
    assert out.dtype == jnp.float32
    assert jnp.array_equal(out, ref), "mismatch vs reference embedding lookup"

    # tail-tile path: B*S not a multiple of 8 / tok_block
    tokens2 = jax.random.randint(jax.random.PRNGKey(1), (3, 5), 0, vocab_size,
                                 dtype=jnp.int32)
    out2 = jax.block_until_ready(initial_layer_forward(tokens2, emb_table))
    assert jnp.array_equal(out2, emb_table[tokens2])

    # multi-tile grid path: two grid steps of a full 512-token slab
    tokens3 = jax.random.randint(jax.random.PRNGKey(2), (4, 256), 0, vocab_size,
                                 dtype=jnp.int32)
    out3 = jax.block_until_ready(initial_layer_forward(tokens3, emb_table))
    assert jnp.array_equal(out3, emb_table[tokens3])

    print("KERNEL_OK")
</pallas_src>

<mosaic_0001>
module attributes {stable_mosaic.version = 11 : i64} {
  func.func @embedding_gather_kernel(%arg0: i32, %arg1: memref<16xi32, #tpu.memory_space<smem>>, %arg2: memref<64x128xf32, #tpu.memory_space<any>>, %arg3: memref<16x128xf32, #tpu.memory_space<vmem>>, %arg4: memref<!tpu.dma_semaphore, #tpu.memory_space<semaphore_mem>>) attributes {dimension_semantics = [#tpu.dimension_semantics<parallel>], iteration_bounds = array<i64: 1>, scalar_prefetch = 1 : i64, scratch_operands = 1 : i64, tpu.core_type = #tpu.core_type<tc>, window_params = [{}, {transform_indices = @transform_1, window_bounds = array<i64: 16, 128>}]} {
    %c16_i32 = arith.constant 16 : i32
    %0 = arith.muli %arg0, %c16_i32 : i32
    %c0_i32 = arith.constant 0 : i32
    %c16_i32_0 = arith.constant 16 : i32
    %1 = arith.addi %c0_i32, %c16_i32_0 : i32
    %c1_i32 = arith.constant 1 : i32
    scf.for %arg5 = %c0_i32 to %1 step %c1_i32  : i32 {
      %c1_i32_5 = arith.constant 1 : i32
      %3 = arith.muli %arg5, %c1_i32_5 : i32
      %c0_i32_6 = arith.constant 0 : i32
      %4 = arith.addi %c0_i32_6, %3 : i32
      %5 = arith.addi %0, %4 : i32
      %6 = arith.index_cast %5 : i32 to index
      %7 = memref.load %arg1[%6] : memref<16xi32, #tpu.memory_space<smem>>
      %c0_i32_7 = arith.constant 0 : i32
      %8 = tpu.memref_slice %arg2[%7, %c0_i32_7] : memref<64x128xf32, #tpu.memory_space<any>> -> memref<1x128xf32, #tpu.memory_space<any>>
      %c0_i32_8 = arith.constant 0 : i32
      %9 = tpu.memref_slice %arg3[%4, %c0_i32_8] : memref<16x128xf32, #tpu.memory_space<vmem>> -> memref<1x128xf32, #tpu.memory_space<vmem>>
      tpu.enqueue_dma source(%8 : memref<1x128xf32, #tpu.memory_space<any>>) target(%9 : memref<1x128xf32, #tpu.memory_space<vmem>>) target_semaphore(%arg4 : memref<!tpu.dma_semaphore, #tpu.memory_space<semaphore_mem>>)
    }
    %c16_i32_1 = arith.constant 16 : i32
    %c0_i32_2 = arith.constant 0 : i32
    %c16_i32_3 = arith.constant 16 : i32
    %2 = arith.addi %c0_i32_2, %c16_i32_3 : i32
    %c1_i32_4 = arith.constant 1 : i32
    scf.for %arg5 = %c0_i32_2 to %2 step %c1_i32_4  : i32 {
      %c0_i32_5 = arith.constant 0 : i32
      %c0_i32_6 = arith.constant 0 : i32
      %3 = tpu.memref_slice %arg2[%c0_i32_5, %c0_i32_6] : memref<64x128xf32, #tpu.memory_space<any>> -> memref<1x128xf32, #tpu.memory_space<any>>
      %c0_i32_7 = arith.constant 0 : i32
      %c0_i32_8 = arith.constant 0 : i32
      %4 = tpu.memref_slice %arg3[%c0_i32_7, %c0_i32_8] : memref<16x128xf32, #tpu.memory_space<vmem>> -> memref<1x128xf32, #tpu.memory_space<vmem>>
      tpu.wait_dma2 semaphore(%arg4 : memref<!tpu.dma_semaphore, #tpu.memory_space<semaphore_mem>>) src(%3 : memref<1x128xf32, #tpu.memory_space<any>>) dst(%4 : memref<1x128xf32, #tpu.memory_space<vmem>>)
    }
    return
  }
  func.func @transform_1(%arg0: i32, %arg1: memref<16xi32, #tpu.memory_space<smem>>) -> (i32, i32) {
    %c0_i32 = arith.constant 0 : i32
    %c0_i32_0 = arith.constant 0 : i32
    return %arg0, %c0_i32 : i32, i32
  }
}

</mosaic_0001>

<bundles_post_ra>
// kernel: tpu_custom_call.1
= control target key start
LH: loop header
LB: loop body
LE: loop exit
PB: predicated region body
PF: predicated region fallthrough
CT: control target
= control target key end

     0   :  { %s249_s0 = inlined_call_operand.hbm [shape: s32[16], index: 0, kind: input, shape index: {}]   ;;  %s250_s1 = inlined_call_operand.hbm [shape: f32[64,128], index: 1, kind: input, shape index: {}]   ;;  %s251_s2 = inlined_call_operand.hbm [shape: f32[16,128], index: 2, kind: output, shape index: {}]  }
   0x1   :  { %s101_s11 = scalar_lea.hbm %s249_s0, 16 }
   0x2   :  { %p102_p0 = scmp.ne.s32.totalorder %s249_s0, %s101_s11  ;;  %p105_p1 = scmp.lt.u32.totalorder %s101_s11, %s249_s0 }
   0x4   :  { %p107_p2 = pnand %p105_p1, %p102_p0 }
   0x6   :  { %110 = shalt.err (!%p107_p2)  }
   0x7   :  { %s179_s16 = smov [#allocation4]  }
   0x8   :  { %8 = dma.hbm_to_smem %s249_s0, 16, %s179_s16, [#allocation3] }
   0x9   :  { %165 = dma.done.wait [#allocation3], 16 }
   0xa   :  { %166 = vsyncadd [#allocation3], 4294967280 }
   0xb   :  { %10 = sfence }
   0xc   :  { %11 = vsyncpa [#allocation6], 0  ;;  %s210_s19 = smov 0  }
   0xd LB: > { %s20_s20 = sld [smem:[#allocation4 + %s173_s19]]  ;;  %s23_s21 = scalar_lea.vmem [#allocation5], %s173_s19  ;;  %s173_s19 = sphi %s210_s19, %s18_s19  }
   0xe   : > { %s31_s22 = sshll.u32 %s23_s21, 4  ;;  %s113_s29 = scalar_lea.hbm %s250_s1, 1024  ;;  %s32_s22 = int_to_ptr.vmem [resolvable:$true] %s31_s22 }
  0x13   : > { %s79_s23 = sshll.u32 %s20_s20, 4 }
  0x14   : > { %s22_s25 = scalar_lea.hbm %s250_s1, %s79_s23 }
  0x15   : > { %s111_s26 = scalar_lea.hbm %s22_s25, 16  ;;  %p114_p4 = scmp.lt.u32.totalorder %s22_s25, %s250_s1 }
  0x16   : > { %p112_p3 = scmp.ne.s32.totalorder %s22_s25, %s111_s26  ;;  %p115_p5 = scmp.lt.u32.totalorder %s113_s29, %s111_s26 }
  0x17   : > { %p117_p7 = scmp.lt.u32.totalorder %s111_s26, %s22_s25 }
  0x18   : > { %p116_p6 = por %p115_p5, %p114_p4 }
  0x1a   : > { %p118_p8 = por %p117_p7, %p116_p6 }
  0x1c   : > { %p119_p9 = pnand %p118_p8, %p112_p3 }
  0x1e   : > { %122 = shalt.err (!%p119_p9)  }
  0x1f   : > { %s123_s4 = scalar_lea.vmem %s32_s22, 16  ;;  %s180_s5 = smov [#allocation5]  }
  0x20   : > { %p124_p10 = scmp.ne.s32.totalorder %s32_s22, %s123_s4  ;;  %s125_s6 = sshll.u32 %s180_s5, 4  ;;  %s226_s6 = int_to_ptr.vmem [resolvable:$false] %s125_s6 }
  0x21   : > { %s127_s7 = scalar_lea.vmem %s226_s6, 256  ;;  %p128_p11 = scmp.lt.s32.totalorder %s32_s22, %s226_s6 }
  0x22   : > { %p129_p12 = scmp.lt.s32.totalorder %s127_s7, %s123_s4 }
  0x24   : > { %p130_p13 = por %p129_p12, %p128_p11 }
  0x26   : > { %p131_p0 = pnand %p130_p13, %p124_p10 }
  0x28   : > { %134 = shalt.err (!%p131_p0)  }
  0x29   : > { %34 = dma.hbm_to_vmem [thread:$0]  %s22_s25, 16, %s32_s22, [#allocation2] }
  0x2a   : > { %s18_s19 = sadd.s32 1, %s173_s19  }
  0x2b   : > { %p15_p1 = scmp.ge.s32.totalorder %s18_s19, 16  }
  0x2c   :  { %s175_s8 = smov (%p15_p1), 0  }
  0x2d   :  { %17 = sbr.rel (!%p15_p1) target bundleno = 13 (0xd), region = 40 }
  0x34 LB: > { %167 = dma.done.wait [#allocation2], 16  ;;  %s177_s8 = sphi %s175_s8, %s40_s8  }
  0x35   : > { %168 = vsyncadd [#allocation2], 4294967280  ;;  %s40_s8 = sadd.s32 1, %s177_s8  }
  0x36   : > { %p37_p2 = scmp.ge.s32.totalorder %s40_s8, 16  }
  0x37   :  { %p136_p3 = scmp.ne.s32.totalorder (%p37_p2), %s226_s6, %s127_s7  ;;  %p140_p4 = scmp.lt.s32.totalorder (%p37_p2), %s226_s6, %s226_s6 }
  0x38   :  { %39 = sbr.rel (!%p37_p2) target bundleno = 52 (0x34), region = 51  ;;  %p141_p5 = scmp.lt.s32.totalorder (%p37_p2), %s127_s7, %s127_s7 }
  0x3a   :  { %p142_p6 = por (%p37_p2), %p141_p5, %p140_p4 }
  0x3c   :  { %p143_p7 = pnand (%p37_p2), %p142_p6, %p136_p3 }
  0x3f   :  { %146 = shalt.err (!%p143_p7)
}
  0x40   :  { %s147_s10 = scalar_lea.hbm %s251_s2, 256 }
  0x41   :  { %p148_p8 = scmp.ne.s32.totalorder %s251_s2, %s147_s10  ;;  %p151_p9 = scmp.lt.u32.totalorder %s147_s10, %s251_s2 }
  0x43   :  { %p153_p10 = pnand %p151_p9, %p148_p8 }
  0x45   :  { %156 = shalt.err (!%p153_p10)
}
  0x46   :  { %s181_s15 = smov 128   ;;  %s182_s16 = smov 8  }
  0x47   :  { %55 = dma.vmem_to_hbm [thread:$0]  %s226_s6, 256, %s251_s2, [#allocation6], %s181_s15, %s181_s15, %s182_s16  }
  0x48   :  { %169 = dma.done.wait [#allocation6], 256  }
  0x49   :  { %170 = vsyncadd [#allocation6], 4294967040 }
  0x4a   :  { %59 = vsyncpa [#allocation6], 1 }
  0x4b   :  { %60 = vsyncmov [#allocation2] }
  0x4e   :  { %s61_s19 = vpop.sfrf %60 }
  0x4f   :  { %p80_p11 = scmp.ne.s32.totalorder %s61_s19, 0 }
  0x51   :  { %65 = shalt.err (%p80_p11)  }

</bundles_post_ra>
